<compile_context>
chip_gen: v6e
topology: v6e:2x2x1
jax: 0.10.0
libtpu: 0.0.40
codegen_flags: <defaults>
</compile_context>

<pallas_src>
import functools
import math

import jax
import jax.numpy as jnp
from jax.experimental import pallas as pl
from jax.experimental.pallas import tpu as pltpu

_HIGHEST = jax.lax.Precision.HIGHEST


def _round_up(n, m):
    return (n + m - 1) // m * m


def _layernorm_kernel(x_ref, g_ref, b_ref, bd_ref, bdt_ref, o_ref, *, dim, k, eps):
    # x_ref: (tile_rows, P) with P = k*dim; g_ref/b_ref: (1, P) f32 (gamma/beta tiled k
    # times); bd_ref: (P, k) block-diagonal ones; bdt_ref: (k, P) its transpose.
    x = x_ref[...].astype(jnp.float32)

    if k == 1:
        # dim >= 128: lanes are already dense; plain lane-reduction path.
        mean = jnp.mean(x, axis=-1, keepdims=True)
        xc = x - mean
        # Unbiased variance (divide by N-1), eps added to std — exact PyTorch spec.
        var = jnp.sum(xc * xc, axis=-1, keepdims=True) * (1.0 / (dim - 1))
        inv = 1.0 / (jnp.sqrt(var) + eps)            # narrow (tile_rows, 1)
        out = xc * inv
    else:
        # Packed path: k original rows live side-by-side in the lane axis.  Segmented
        # row sums / broadcasts run on the MXU (idle in this kernel) so the VPU only
        # sees ~5 wide ops per element.
        bd = bd_ref[...]
        bdt = bdt_ref[...]
        sums = jnp.dot(x, bd, preferred_element_type=jnp.float32,
                       precision=_HIGHEST)           # (tile_rows, k)
        mean_seg = sums * (1.0 / dim)
        mean = jnp.dot(mean_seg, bdt, preferred_element_type=jnp.float32,
                       precision=_HIGHEST)           # broadcast back to (tile_rows, P)
        xc = x - mean
        sq = jnp.dot(xc * xc, bd, preferred_element_type=jnp.float32,
                     precision=_HIGHEST)             # (tile_rows, k)
        var_seg = sq * (1.0 / (dim - 1))
        inv_seg = 1.0 / (jnp.sqrt(var_seg) + eps)    # narrow (tile_rows, k)
        inv = jnp.dot(inv_seg, bdt, preferred_element_type=jnp.float32,
                      precision=_HIGHEST)            # (tile_rows, P)
        out = xc * inv

    out = g_ref[...] * out + b_ref[...]
    o_ref[...] = out.astype(o_ref.dtype)


def layer_norm(x, gamma, beta, *, eps=1e-6, tile_rows=None):
    """x: (..., dim); gamma/beta: (dim,). Normalizes over the last axis."""
    orig_shape = x.shape
    dim = orig_shape[-1]
    if dim < 2:
        # torch.std(unbiased=True) over a single element is NaN; refuse explicitly.
        raise ValueError("LayerNorm with unbiased std requires dim >= 2")

    x2 = x.reshape(-1, dim)
    rows = x2.shape[0]
    dtype_bytes = jnp.dtype(x2.dtype).itemsize
    # Sublane packing: 8 rows/vreg for 4-byte, 16 for 2-byte, 32 for 1-byte dtypes.
    sublane = max(8, 32 // dtype_bytes)

    # Lane packing: fold k rows into the lane axis so the block's last dim is a
    # multiple of 128 (dim=32 -> k=4, P=128).  k=1 for dim >= 128.
    k = 128 // math.gcd(dim, 128) if dim < 128 else 1
    P = k * dim

    # Pad rows to a multiple of k, then fold k rows per packed row.
    rows_k = _round_up(rows, k)
    if rows_k != rows:
        x2 = jnp.pad(x2, ((0, rows_k - rows), (0, 0)))  # zero pad: xc == 0, finite out
    xp = x2.reshape(rows_k // k, P)
    prows = xp.shape[0]

    # Generation-aware VMEM budget: 64 MiB scoped on v5e/v6e (128 MiB physical),
    # 48 MiB on v7x (64 MiB physical per TC).
    try:
        vmem_cap = int(pltpu.get_tpu_info().vmem_capacity_bytes)
    except Exception:
        vmem_cap = 64 * 1024 * 1024
    vmem_limit = min(64 * 1024 * 1024, (3 * vmem_cap) // 4)

    if tile_rows is None:
        # Per packed row: in+out blocks double-buffered at the I/O dtype, plus ~6
        # live full-width f32 temporaries inside the body (conservative).
        bytes_per_row = 4 * P * dtype_bytes + 6 * P * 4
        budget = vmem_limit - (2 << 20)  # headroom for gamma/beta/ones/compiler scratch
        tile_rows = max(sublane, (budget // bytes_per_row) // sublane * sublane)
        # TODO(synk): for pathological dim where even `sublane` rows exceed the budget,
        # add a second grid axis over dim with a two-pass reduction.
    tile_rows = min(tile_rows, _round_up(prows, sublane))
    tile_rows = max(sublane, _round_up(tile_rows, sublane))

    prows_padded = _round_up(prows, tile_rows)
    if prows_padded != prows:
        xp = jnp.pad(xp, ((0, prows_padded - prows), (0, 0)))

    # Params pre-cast to f32 once here; tiled k times so each lane segment sees gamma.
    g2 = jnp.tile(gamma.astype(jnp.float32), k).reshape(1, P)
    b2 = jnp.tile(beta.astype(jnp.float32), k).reshape(1, P)

    # Block-diagonal ones (P, k): column j selects the lanes of segment j.
    seg = jnp.arange(P, dtype=jnp.int32) // dim
    bd = (seg[:, None] == jnp.arange(k, dtype=jnp.int32)[None, :]).astype(jnp.float32)
    bdt = jnp.transpose(bd)

    kernel = functools.partial(_layernorm_kernel, dim=dim, k=k, eps=eps)

    out = pl.pallas_call(
        kernel,
        out_shape=jax.ShapeDtypeStruct((prows_padded, P), x.dtype),
        grid_spec=pltpu.PrefetchScalarGridSpec(
            num_scalar_prefetch=0,
            grid=(prows_padded // tile_rows,),
            in_specs=[
                pl.BlockSpec((tile_rows, P), lambda i: (i, 0)),
                pl.BlockSpec((1, P), lambda i: (0, 0)),
                pl.BlockSpec((1, P), lambda i: (0, 0)),
                pl.BlockSpec((P, k), lambda i: (0, 0)),
                pl.BlockSpec((k, P), lambda i: (0, 0)),
            ],
            out_specs=pl.BlockSpec((tile_rows, P), lambda i: (i, 0)),
        ),
        compiler_params=pltpu.CompilerParams(
            dimension_semantics=("parallel",),
            vmem_limit_bytes=int(vmem_limit),
        ),
    )(xp, g2, b2, bd, bdt)

    if prows_padded != prows:
        out = out[:prows]
    out = out.reshape(rows_k, dim)
    if rows_k != rows:
        out = out[:rows]
    return out.reshape(orig_shape)


def _reference(x, gamma, beta, eps=1e-6):
    x = x.astype(jnp.float32)
    mean = jnp.mean(x, axis=-1, keepdims=True)
    # Unbiased std + eps added to std, matching the PyTorch module.
    var = jnp.sum((x - mean) ** 2, axis=-1, keepdims=True) / (x.shape[-1] - 1)
    std = jnp.sqrt(var)
    out = (x - mean) / (std + eps)
    return gamma * out + beta


if __name__ == "__main__":
    key = jax.random.PRNGKey(0)
    batch, seq, hidden = 2, 8, 32

    x = jax.random.normal(key, (batch, seq, hidden), dtype=jnp.float32)
    # Deterministic parameter init, matching torch.ones / torch.zeros.
    gamma = jnp.ones((hidden,), dtype=jnp.float32)
    beta = jnp.zeros((hidden,), dtype=jnp.float32)

    out = jax.block_until_ready(layer_norm(x, gamma, beta, eps=1e-6))
    ref = _reference(x, gamma, beta, eps=1e-6)
    assert out.shape == x.shape
    assert jnp.allclose(out, ref, atol=1e-5, rtol=1e-5)

    # Row count not a multiple of the pack factor / tile -> padding path (packed branch).
    x2 = jax.random.normal(jax.random.PRNGKey(1), (3, 7, hidden), dtype=jnp.float32)
    out2 = jax.block_until_ready(layer_norm(x2, gamma, beta, eps=1e-6))
    assert jnp.allclose(out2, _reference(x2, gamma, beta, eps=1e-6),
                        atol=1e-5, rtol=1e-5)

    # dim >= 128 -> exercises the unpacked (k == 1) lane-reduction branch.
    hidden3 = 256
    x3 = jax.random.normal(jax.random.PRNGKey(2), (4, 8, hidden3), dtype=jnp.float32)
    g3 = jnp.ones((hidden3,), dtype=jnp.float32)
    b3 = jnp.zeros((hidden3,), dtype=jnp.float32)
    out3 = jax.block_until_ready(layer_norm(x3, g3, b3, eps=1e-6))
    assert jnp.allclose(out3, _reference(x3, g3, b3, eps=1e-6),
                        atol=1e-5, rtol=1e-5)

    print("KERNEL_OK")
</pallas_src>

<mosaic_0001>
module attributes {stable_mosaic.version = 11 : i64} {
  func.func @_layernorm_kernel(%arg0: i32, %arg1: memref<8x128xf32, #tpu.memory_space<vmem>>, %arg2: memref<1x128xf32, #tpu.memory_space<vmem>>, %arg3: memref<1x128xf32, #tpu.memory_space<vmem>>, %arg4: memref<128x4xf32, #tpu.memory_space<vmem>>, %arg5: memref<4x128xf32, #tpu.memory_space<vmem>>, %arg6: memref<8x128xf32, #tpu.memory_space<vmem>>) attributes {dimension_semantics = [#tpu.dimension_semantics<parallel>], iteration_bounds = array<i64: 1>, scalar_prefetch = 0 : i64, scratch_operands = 0 : i64, tpu.core_type = #tpu.core_type<tc>, window_params = [{transform_indices = @transform_0, window_bounds = array<i64: 8, 128>}, {pipeline_mode = #tpu.pipeline_mode<synchronous>, transform_indices = @transform_1, window_bounds = array<i64: 1, 128>}, {pipeline_mode = #tpu.pipeline_mode<synchronous>, transform_indices = @transform_2, window_bounds = array<i64: 1, 128>}, {pipeline_mode = #tpu.pipeline_mode<synchronous>, transform_indices = @transform_3, window_bounds = array<i64: 128, 4>}, {pipeline_mode = #tpu.pipeline_mode<synchronous>, transform_indices = @transform_4, window_bounds = array<i64: 4, 128>}, {transform_indices = @transform_5, window_bounds = array<i64: 8, 128>}]} {
    %c0 = arith.constant 0 : index
    %c0_0 = arith.constant 0 : index
    %0 = vector.load %arg1[%c0, %c0_0] : memref<8x128xf32, #tpu.memory_space<vmem>>, vector<8x128xf32>
    %c0_1 = arith.constant 0 : index
    %c0_2 = arith.constant 0 : index
    %1 = vector.load %arg4[%c0_1, %c0_2] : memref<128x4xf32, #tpu.memory_space<vmem>>, vector<128x4xf32>
    %c0_3 = arith.constant 0 : index
    %c0_4 = arith.constant 0 : index
    %2 = vector.load %arg5[%c0_3, %c0_4] : memref<4x128xf32, #tpu.memory_space<vmem>>, vector<4x128xf32>
    %cst = arith.constant dense<0.000000e+00> : vector<8x4xf32>
    %3 = tpu.matmul %0, %1, %cst {dimension_numbers = #tpu.dot_dimension_numbers<[1], [0], [0], [1], [0, 0, 1, 1], [], []>, precision = #tpu.contract_precision<fp32>} : vector<8x128xf32>, vector<128x4xf32>, vector<8x4xf32> -> vector<8x4xf32>
    %cst_5 = arith.constant 3.125000e-02 : f32
    %4 = vector.broadcast %cst_5 : f32 to vector<8x4xf32>
    %5 = arith.mulf %3, %4 : vector<8x4xf32>
    %cst_6 = arith.constant dense<0.000000e+00> : vector<8x128xf32>
    %6 = tpu.matmul %5, %2, %cst_6 {dimension_numbers = #tpu.dot_dimension_numbers<[1], [0], [0], [1], [0, 0, 1, 1], [], []>, precision = #tpu.contract_precision<fp32>} : vector<8x4xf32>, vector<4x128xf32>, vector<8x128xf32> -> vector<8x128xf32>
    %7 = arith.subf %0, %6 : vector<8x128xf32>
    %8 = arith.mulf %7, %7 : vector<8x128xf32>
    %cst_7 = arith.constant dense<0.000000e+00> : vector<8x4xf32>
    %9 = tpu.matmul %8, %1, %cst_7 {dimension_numbers = #tpu.dot_dimension_numbers<[1], [0], [0], [1], [0, 0, 1, 1], [], []>, precision = #tpu.contract_precision<fp32>} : vector<8x128xf32>, vector<128x4xf32>, vector<8x4xf32> -> vector<8x4xf32>
    %cst_8 = arith.constant 0.0322580636 : f32
    %10 = vector.broadcast %cst_8 : f32 to vector<8x4xf32>
    %11 = arith.mulf %9, %10 : vector<8x4xf32>
    %12 = math.sqrt %11 : vector<8x4xf32>
    %cst_9 = arith.constant 9.99999997E-7 : f32
    %13 = vector.broadcast %cst_9 : f32 to vector<8x4xf32>
    %14 = arith.addf %12, %13 : vector<8x4xf32>
    %cst_10 = arith.constant 1.000000e+00 : f32
    %15 = vector.broadcast %cst_10 : f32 to vector<8x4xf32>
    %16 = arith.divf %15, %14 : vector<8x4xf32>
    %cst_11 = arith.constant dense<0.000000e+00> : vector<8x128xf32>
    %17 = tpu.matmul %16, %2, %cst_11 {dimension_numbers = #tpu.dot_dimension_numbers<[1], [0], [0], [1], [0, 0, 1, 1], [], []>, precision = #tpu.contract_precision<fp32>} : vector<8x4xf32>, vector<4x128xf32>, vector<8x128xf32> -> vector<8x128xf32>
    %18 = arith.mulf %7, %17 : vector<8x128xf32>
    %c0_12 = arith.constant 0 : index
    %c0_13 = arith.constant 0 : index
    %19 = vector.load %arg2[%c0_12, %c0_13] : memref<1x128xf32, #tpu.memory_space<vmem>>, vector<1x128xf32>
    %20 = vector.broadcast %19 : vector<1x128xf32> to vector<8x128xf32>
    %21 = arith.mulf %20, %18 : vector<8x128xf32>
    %c0_14 = arith.constant 0 : index
    %c0_15 = arith.constant 0 : index
    %22 = vector.load %arg3[%c0_14, %c0_15] : memref<1x128xf32, #tpu.memory_space<vmem>>, vector<1x128xf32>
    %23 = vector.broadcast %22 : vector<1x128xf32> to vector<8x128xf32>
    %24 = arith.addf %21, %23 : vector<8x128xf32>
    %c0_16 = arith.constant 0 : index
    %c0_17 = arith.constant 0 : index
    %25 = vector.load %arg6[%c0_16, %c0_17] : memref<8x128xf32, #tpu.memory_space<vmem>>, vector<8x128xf32>
    tpu.vector_store %arg6[%c0_16, %c0_17], %24 {strides = array<i32>} : memref<8x128xf32, #tpu.memory_space<vmem>>, vector<8x128xf32>,
    return
  }
  func.func @transform_0(%arg0: i32) -> (i32, i32) {
    %c0_i32 = arith.constant 0 : i32
    %c0_i32_0 = arith.constant 0 : i32
    return %arg0, %c0_i32 : i32, i32
  }
  func.func @transform_1(%arg0: i32) -> (i32, i32) {
    %c0_i32 = arith.constant 0 : i32
    %c0_i32_0 = arith.constant 0 : i32
    %c0_i32_1 = arith.constant 0 : i32
    return %c0_i32, %c0_i32_0 : i32, i32
  }
  func.func @transform_2(%arg0: i32) -> (i32, i32) {
    %c0_i32 = arith.constant 0 : i32
    %c0_i32_0 = arith.constant 0 : i32
    %c0_i32_1 = arith.constant 0 : i32
    return %c0_i32, %c0_i32_0 : i32, i32
  }
  func.func @transform_3(%arg0: i32) -> (i32, i32) {
    %c0_i32 = arith.constant 0 : i32
    %c0_i32_0 = arith.constant 0 : i32
    %c0_i32_1 = arith.constant 0 : i32
    return %c0_i32, %c0_i32_0 : i32, i32
  }
  func.func @transform_4(%arg0: i32) -> (i32, i32) {
    %c0_i32 = arith.constant 0 : i32
    %c0_i32_0 = arith.constant 0 : i32
    %c0_i32_1 = arith.constant 0 : i32
    return %c0_i32, %c0_i32_0 : i32, i32
  }
  func.func @transform_5(%arg0: i32) -> (i32, i32) {
    %c0_i32 = arith.constant 0 : i32
    %c0_i32_0 = arith.constant 0 : i32
    return %arg0, %c0_i32 : i32, i32
  }
}

</mosaic_0001>

<bundles_post_ra>
// kernel: tpu_custom_call.1
= control target key start
LH: loop header
LB: loop body
LE: loop exit
PB: predicated region body
PF: predicated region fallthrough
CT: control target
= control target key end

     0   :  { %v3833_v3 = vmov 0.0   ;;  %vm3010_vm0 = vmmov 0   ;;  %s3803_s0 = inlined_call_operand.vmem [shape: f32[8,128], index: 0, kind: input, shape index: {}]   ;;  %s3804_s1 = inlined_call_operand.vmem [shape: f32[1,128], index: 1, kind: input, shape index: {}]   ;;  %s3805_s2 = inlined_call_operand.vmem [shape: f32[1,128], index: 2, kind: input, shape index: {}]   ;;  %s3806_s3 = inlined_call_operand.vmem [shape: f32[128,4], index: 3, kind: input, shape index: {}]   ;;  %s3807_s4 = inlined_call_operand.vmem [shape: f32[4,128], index: 4, kind: input, shape index: {}]   ;;  %s3808_s5 = inlined_call_operand.hbm [shape: f32[8,128], index: 5, kind: output, shape index: {}]  }
   0x1   :  { %v37_v0 = vld [vmem:[%s3806_s3 + $0x78] sm:$0xff]  ;;  %v36_v1 = vld [vmem:[%s3806_s3 + $0x70] sm:$0xff]  ;;  %v35_v2 = vld [vmem:[%s3806_s3 + $0x68] sm:$0xff]  ;;  %2500 = vmatprep.subr.mxu0 %v3833_v3  ;;  %2535 = vmatprep.subr.mxu1 %v3833_v3 }
   0x2   :  { %v3052_v4 = vand.u32 4294901760, %v37_v0  ;;  %v3054_v5 = vand.u32 4294901760, %v36_v1  ;;  %v3056_v6 = vand.u32 4294901760, %v35_v2  ;;  %v34_v7 = vld [vmem:[%s3806_s3 + $0x60] sm:$0xff]  ;;  %v33_v8 = vld [vmem:[%s3806_s3 + $0x58] sm:$0xff]  ;;  %v32_v9 = vld [vmem:[%s3806_s3 + $0x50] sm:$0xff]  ;;  %2532 = vmatprep.mubr.msk.f32.mxu0 %vm3010_vm0, %v3833_v3  ;;  %2567 = vmatprep.mubr.msk.f32.mxu1 %vm3010_vm0, %v3833_v3 }
   0x3   :  { %v3068_v10 = vand.u32 4294901760, %v34_v7  ;;  %v3070_v11 = vand.u32 4294901760, %v33_v8  ;;  %v3072_v12 = vand.u32 4294901760, %v32_v9  ;;  %v31_v13 = vld [vmem:[%s3806_s3 + $0x48] sm:$0xff]  ;;  %v30_v14 = vld [vmem:[%s3806_s3 + $0x40] sm:$0xff]  ;;  %v29_v19 = vld [vmem:[%s3806_s3 + $0x38] sm:$0xff] }
   0x4   :  { %2501 = vmatpush3.msra.mxu0 %v3052_v4  ;;  %v3086_v15 = vsub.f32 %v37_v0, %v3052_v4  ;;  %v3089_v16 = vsub.f32 %v36_v1, %v3054_v5  ;;  %v3091_v17 = vand.u32 4294901760, %v31_v13  ;;  %v3094_v18 = vsub.f32 %v35_v2, %v3056_v6  ;;  %v28_v26 = vld [vmem:[%s3806_s3 + $0x30] sm:$0xff] }
   0x5   :  { %2502 = vmatprep.subr.mxu0 %v3833_v3  ;;  %v3101_v20 = vsub.f32 %v34_v7, %v3068_v10  ;;  %v3104_v21 = vsub.f32 %v33_v8, %v3070_v11  ;;  %v3116_v25 = vand.u32 4294901760, %v30_v14  ;;  %v3125_v28 = vand.u32 4294901760, %v29_v19 }
   0x6   :  { %2503 = vmatpush3.msra.mxu0 %v3054_v5  ;;  %v3108_v22 = vand.u32 4294901760, %v3086_v15  ;;  %v3111_v23 = vand.u32 4294901760, %v3089_v16  ;;  %v3114_v24 = vand.u32 4294901760, %v3094_v18  ;;  %v3131_v30 = vsub.f32 %v32_v9, %v3072_v12 }
   0x7   :  { %2504 = vmatprep.subr.mxu0 %v3833_v3  ;;  %v3123_v27 = vand.u32 4294901760, %v3101_v20  ;;  %v3128_v29 = vand.u32 4294901760, %v3104_v21 }
   0x8   :  { %3836 = vst [vmem:[#allocation5_spill] sm:$0xff] %v3108_v22  ;;  %3837 = vst [vmem:[#allocation6_spill] sm:$0xff] %v3111_v23 }
   0x9   :  { %3838 = vst [vmem:[#allocation7_spill] sm:$0xff] %v3114_v24  ;;  %3839 = vst [vmem:[#allocation8_spill] sm:$0xff] %v3123_v27 }
   0xa   :  { %3840 = vst [vmem:[#allocation9_spill] sm:$0xff] %v3128_v29 }
   0xb   :  { %10 = vsyncpa [#allocation3], 0  ;;  %2505 = vmatpush3.msra.mxu0 %v3056_v6  ;;  %v134_v31 = vsub.f32 %v3086_v15, %v3108_v22  ;;  %v141_v32 = vsub.f32 %v3089_v16, %v3111_v23  ;;  %v148_v33 = vsub.f32 %v3094_v18, %v3114_v24  ;;  %v3141_v34 = vsub.f32 %v31_v13, %v3091_v17  ;;  %v27_v36 = vld [vmem:[%s3806_s3 + $0x28] sm:$0xff]  ;;  %v26_v41 = vld [vmem:[%s3806_s3 + $0x20] sm:$0xff]  ;;  %s3011_s30 = smov [#allocation2]  }
   0xc   :  { %2506 = vmatprep.subr.mxu0 %v3833_v3  ;;  %v3144_v35 = vand.u32 4294901760, %v28_v26  ;;  %v155_v39 = vsub.f32 %v3101_v20, %v3123_v27  ;;  %v3157_v40 = vand.u32 4294901760, %v3131_v30  ;;  %v162_v42 = vsub.f32 %v3104_v21, %v3128_v29  ;;  %v25_v49 = vld [vmem:[%s3806_s3 + $0x18] sm:$0xff]  ;;  %v3190_v50 = vld [vmem:[%s3803_s0] sm:$0xff]  ;;  %v24_v54 = vld [vmem:[%s3806_s3 + $0x10] sm:$0xff]  ;;  %s2262_s6 = sshll.u32 %s3011_s30, 4  ;;  %s2263_s6 = int_to_ptr.vmem [resolvable:$true] %s2262_s6 }
   0xd   :  { %2507 = vmatpush3.msra.mxu0 %v3068_v10  ;;  %v3150_v37 = vand.u32 4294901760, %v134_v31  ;;  %v3152_v38 = vand.u32 4294901760, %v141_v32  ;;  %v3166_v43 = vsub.f32 %v30_v14, %v3116_v25  ;;  %v3170_v44 = vand.u32 4294901760, %v148_v33  ;;  %3843 = vst [vmem:[#allocation12_spill] sm:$0xff] %v3190_v50  ;;  %v23_v60 = vld [vmem:[%s3806_s3 + $0x8] sm:$0xff]  ;;  %v22_v7 = vld [vmem:[%s3806_s3] sm:$0xff]  ;;  %p2992_p1 = scmp.lt.s32.totalorder %s2263_s6, %s2263_s6 }
   0xe   :  { %3841 = vst [vmem:[#allocation10_spill] sm:$0xff] %v3157_v40  ;;  %2508 = vmatprep.subr.mxu0 %v3833_v3  ;;  %v3172_v45 = vand.u32 4294901760, %v27_v36  ;;  %v3175_v46 = vand.u32 4294901760, %v3141_v34  ;;  %v3178_v47 = vsub.f32 %v29_v19, %v3125_v28  ;;  %v3182_v48 = vand.u32 4294901760, %v26_v41  ;;  %s2987_s7 = scalar_lea.vmem %s2263_s6, 128 }
   0xf   :  { %2509 = vmatpush3.msra.mxu0 %v3070_v11  ;;  %2536 = vmatpush3.msra.mxu1 %v3150_v37  ;;  %v3194_v51 = vand.u32 4294901760, %v155_v39  ;;  %v169_v52 = vsub.f32 %v3131_v30, %v3157_v40  ;;  %v3199_v53 = vand.u32 4294901760, %v3166_v43  ;;  %v3205_v55 = vsub.f32 %v28_v26, %v3144_v35  ;;  %p2988_p0 = scmp.ne.s32.totalorder %s2263_s6, %s2987_s7  ;;  %p2993_p2 = scmp.lt.s32.totalorder %s2987_s7, %s2987_s7 }
  0x10   :  { %3842 = vst [vmem:[#allocation11_spill] sm:$0xff] %v3175_v46  ;;  %2510 = vmatprep.subr.mxu0 %v3833_v3  ;;  %2537 = vmatprep.subr.mxu1 %v3833_v3  ;;  %v3209_v56 = vand.u32 4294901760, %v162_v42  ;;  %v3212_v57 = vand.u32 4294901760, %v3178_v47  ;;  %v176_v58 = vsub.f32 %v3141_v34, %v3175_v46  ;;  %v3218_v59 = vand.u32 4294901760, %v25_v49 }
  0x11   :  { %2511 = vmatpush3.msra.mxu0 %v3072_v12  ;;  %2538 = vmatpush3.msra.mxu1 %v3152_v38  ;;  %3844 = vst [vmem:[#allocation13_spill] sm:$0xff] %v3194_v51  ;;  %3845 = vst [vmem:[#allocation14_spill] sm:$0xff] %v3199_v53  ;;  %v3224_v61 = vsub.f32 %v27_v36, %v3172_v45  ;;  %v3227_v62 = vand.u32 4294901760, %v3190_v50  ;;  %v3231_v63 = vand.u32 4294901760, %v24_v54  ;;  %v3235_v0 = vand.u32 4294901760, %v169_v52  ;;  %p2994_p3 = por %p2993_p2, %p2992_p1 }
  0x12   :  { %2512 = vmatprep.subr.mxu0 %v3833_v3  ;;  %2539 = vmatprep.subr.mxu1 %v3833_v3  ;;  %3846 = vst [vmem:[#allocation15_spill] sm:$0xff] %v3209_v56  ;;  %3847 = vst [vmem:[#allocation16_spill] sm:$0xff] %v3212_v57  ;;  %v183_v1 = vsub.f32 %v3166_v43, %v3199_v53  ;;  %v3240_v2 = vand.u32 4294901760, %v3205_v55  ;;  %v3246_v8 = vsub.f32 %v26_v41, %v3182_v48  ;;  %vm685_vm1 = vcmask 1043456  }
  0x13   :  { %2513 = vmatpush3.msra.mxu0 %v3091_v17  ;;  %2540 = vmatpush3.msra.mxu1 %v3170_v44  ;;  %3848 = vst [vmem:[#allocation17_spill] sm:$0xff] %v3235_v0  ;;  %v190_v9 = vsub.f32 %v3178_v47, %v3212_v57  ;;  %v3252_v13 = vand.u32 4294901760, %v23_v60  ;;  %v3256_v14 = vand.u32 4294901760, %v176_v58  ;;  %v3259_v19 = vand.u32 4294901760, %v3224_v61  ;;  %p2995_p4 = pnand %p2994_p3, %p2988_p0 }
  0x14   :  { %2514 = vmatprep.subr.mxu0 %v3833_v3  ;;  %2541 = vmatprep.subr.mxu1 %v3833_v3  ;;  %3849 = vst [vmem:[#allocation18_spill] sm:$0xff] %v3240_v2  ;;  %v3263_v26 = vsub.f32 %v3190_v50, %v3227_v62  ;;  %v3266_v31 = vsub.f32 %v25_v49, %v3218_v59  ;;  %v3270_v32 = vand.u32 4294901760, %v22_v7  ;;  %v3274_v33 = vand.u32 4294901760, %v183_v1 }
  0x15   :  { %2515 = vmatpush3.msra.mxu0 %v3116_v25  ;;  %2542 = vmatpush3.msra.mxu1 %v3194_v51  ;;  %3850 = vst [vmem:[#allocation19_spill] sm:$0xff] %v3256_v14  ;;  %3851 = vst [vmem:[#allocation20_spill] sm:$0xff] %v3259_v19  ;;  %v197_v36 = vsub.f32 %v3205_v55, %v3240_v2  ;;  %v3279_v39 = vand.u32 4294901760, %v3246_v8  ;;  %v3282_v41 = vsub.f32 %v24_v54, %v3231_v63  ;;  %vm681_vm2 = vcmask 31744  }
  0x16   :  { %2516 = vmatprep.subr.mxu0 %v3833_v3  ;;  %2543 = vmatprep.subr.mxu1 %v3833_v3  ;;  %3852 = vst [vmem:[#allocation21_spill] sm:$0xff] %v3274_v33  ;;  %v3286_v42 = vand.u32 4294901760, %v190_v9  ;;  %v204_v49 = vsub.f32 %v3224_v61, %v3259_v19  ;;  %v3294_v58 = vand.u32 4294901760, %v3266_v31  ;;  %v3297_v54 = vsub.f32 %v23_v60, %v3252_v13 }
  0x17   :  { %2517 = vmatpush3.msra.mxu0 %v3125_v28  ;;  %2544 = vmatpush3.msra.mxu1 %v3209_v56  ;;  %3853 = vst [vmem:[#allocation22_spill] sm:$0xff] %v3279_v39  ;;  %v3303_v1 = vand.u32 4294901760, %v197_v36  ;;  %v211_v9 = vsub.f32 %v3246_v8, %v3279_v39  ;;  %v3308_v52 = vand.u32 4294901760, %v3282_v41  ;;  %v3311_v50 = vsub.f32 %v22_v7, %v3270_v32 }
  0x18   :  { %2518 = vmatprep.subr.mxu0 %v3833_v3  ;;  %2545 = vmatprep.subr.mxu1 %v3833_v3  ;;  %3854 = vst [vmem:[#allocation23_spill] sm:$0xff] %v3286_v42  ;;  %3855 = vst [vmem:[#allocation24_spill] sm:$0xff] %v3294_v58  ;;  %v3317_v60 = vand.u32 4294901760, %v204_v49  ;;  %v3858_v36 = vand.u32 4294901760, %v3263_v26  ;;  %v3325_v7 = vand.u32 4294901760, %v3297_v54 }
  0x19   :  { %2519 = vmatpush3.msra.mxu0 %v3144_v35  ;;  %2546 = vmatpush3.msra.mxu1 %v3235_v0  ;;  %3856 = vst [vmem:[#allocation25_spill] sm:$0xff] %v3303_v1  ;;  %3857 = vst [vmem:[#allocation26_spill] sm:$0xff] %v3308_v52  ;;  %v3331_v49 = vand.u32 4294901760, %v211_v9 }
  0x1a   :  { %2520 = vmatprep.subr.mxu0 %v3833_v3  ;;  %2547 = vmatprep.subr.mxu1 %v3833_v3  ;;  %3859 = vst [vmem:[#allocation27_spill] sm:$0xff] %v3325_v7  ;;  %v232_v9 = vsub.f32 %v3297_v54, %v3325_v7 }
  0x1b   :  { %2521 = vmatpush3.msra.mxu0 %v3172_v45  ;;  %2548 = vmatpush3.msra.mxu1 %v3256_v14  ;;  %v218_v14 = vsub.f32 %v3266_v31, %v3294_v58 }
  0x1c   :  { %2522 = vmatprep.subr.mxu0 %v3833_v3  ;;  %2549 = vmatprep.subr.mxu1 %v3833_v3 }
  0x1d   :  { %2523 = vmatpush3.msra.mxu0 %v3182_v48  ;;  %2550 = vmatpush3.msra.mxu1 %v3274_v33  ;;  %v123_v33 = vsub.f32 %v3263_v26, %v3858_v36  ;;  %v3336_v36 = vand.u32 4294901760, %v3311_v50  ;;  %v3342_v56 = vand.u32 4294901760, %v218_v14  ;;  %v3357_v14 = vand.u32 4294901760, %v232_v9 }
  0x1e   :  { %2524 = vmatprep.subr.mxu0 %v3833_v3  ;;  %2551 = vmatprep.subr.mxu1 %v3833_v3 }
  0x1f   :  { %2525 = vmatpush3.msra.mxu0 %v3218_v59  ;;  %2552 = vmatpush3.msra.mxu1 %v3286_v42  ;;  %v225_v42 = vsub.f32 %v3282_v41, %v3308_v52  ;;  %3860 = vst [vmem:[#allocation28_spill] sm:$0xff] %v3336_v36  ;;  %v124_v0 = vand.u32 4294901760, %v123_v33  ;;  %v239_v51 = vsub.f32 %v3311_v50, %v3336_v36 }
  0x20   :  { %2526 = vmatprep.subr.mxu0 %v3833_v3  ;;  %2553 = vmatprep.subr.mxu1 %v3833_v3 }
  0x21   :  { %2527 = vmatpush3.msra.mxu0 %v3231_v63  ;;  %2554 = vmatpush3.msra.mxu1 %v3303_v1  ;;  %v3350_v1 = vand.u32 4294901760, %v225_v42  ;;  %v3363_v33 = vand.u32 4294901760, %v239_v51  ;;  %v3861_v51 = vand.u32 4294901760, %v3263_v26 }
  0x22   :  { %2528 = vmatprep.subr.mxu0 %v3833_v3  ;;  %2555 = vmatprep.subr.mxu1 %v3833_v3 }
  0x23   :  { %2529 = vmatpush3.msra.mxu0 %v3252_v13  ;;  %2556 = vmatpush3.msra.mxu1 %v3317_v60 }
  0x24   :  { %2530 = vmatprep.subr.mxu0 %v3833_v3  ;;  %2557 = vmatprep.subr.mxu1 %v3833_v3 }
  0x25   :  { %2531 = vmatpush3.msra.mxu0 %v3270_v32  ;;  %2558 = vmatpush3.msra.mxu1 %v3331_v49 }
  0x26   :  { %2559 = vmatprep.subr.mxu1 %v3833_v3  ;;  %2570 = vmatprep.subr.mxu0 %v3833_v3 }
  0x27   :  { %2533 = vmatmul.mubr.f32.vlgmr.msra.gmra.mxu0 %v124_v0  ;;  %2560 = vmatpush3.msra.mxu1 %v3342_v56  ;;  %v38_v0 = vld [vmem:[%s3807_s4] sm:$0xf] }
  0x28   :  { %2571 = vmatpush3.msra.mxu0 %v3086_v15  ;;  %2561 = vmatprep.subr.mxu1 %v3833_v3 }
  0x29   :  { %2572 = vmatprep.subr.mxu0 %v3833_v3  ;;  %2562 = vmatpush3.msra.mxu1 %v3350_v1 }
  0x2a   :  { %2573 = vmatpush3.msra.mxu0 %v3089_v16  ;;  %2563 = vmatprep.subr.mxu1 %v3833_v3 }
  0x2b   :  { %2574 = vmatprep.subr.mxu0 %v3833_v3  ;;  %2564 = vmatpush3.msra.mxu1 %v3357_v14 }
  0x2c   :  { %2575 = vmatpush3.msra.mxu0 %v3094_v18  ;;  %2565 = vmatprep.subr.mxu1 %v3833_v3 }
  0x2d   :  { %2576 = vmatprep.subr.mxu0 %v3833_v3  ;;  %2566 = vmatpush3.msra.mxu1 %v3363_v33 }
  0x2e   :  { %2577 = vmatpush3.msra.mxu0 %v3101_v20  ;;  %2568 = vmatmul.mubr.f32.vlgmr.msra.gmra.mxu1 %v3227_v62 }
  0x2f   :  { %2578 = vmatprep.subr.mxu0 %v3833_v3  ;;  %2605 = vmatprep.subr.mxu1 %v3833_v3 }
  0x30   :  { %2579 = vmatpush3.msra.mxu0 %v3104_v21  ;;  %2606 = vmatpush3.msra.mxu1 %v3052_v4 }
  0x31   :  { %2580 = vmatprep.subr.mxu0 %v3833_v3  ;;  %2607 = vmatprep.subr.mxu1 %v3833_v3 }
  0x32   :  { %2581 = vmatpush3.msra.mxu0 %v3131_v30  ;;  %2608 = vmatpush3.msra.mxu1 %v3054_v5 }
  0x33   :  { %2582 = vmatprep.subr.mxu0 %v3833_v3  ;;  %2609 = vmatprep.subr.mxu1 %v3833_v3 }
  0x34   :  { %2583 = vmatpush3.msra.mxu0 %v3141_v34  ;;  %2610 = vmatpush3.msra.mxu1 %v3056_v6 }
  0x35   :  { %2584 = vmatprep.subr.mxu0 %v3833_v3  ;;  %2611 = vmatprep.subr.mxu1 %v3833_v3 }
  0x36   :  { %2585 = vmatpush3.msra.mxu0 %v3166_v43  ;;  %2612 = vmatpush3.msra.mxu1 %v3068_v10 }
  0x37   :  { %2586 = vmatprep.subr.mxu0 %v3833_v3  ;;  %2613 = vmatprep.subr.mxu1 %v3833_v3 }
  0x38   :  { %2587 = vmatpush3.msra.mxu0 %v3178_v47  ;;  %2614 = vmatpush3.msra.mxu1 %v3070_v11 }
  0x39   :  { %2588 = vmatprep.subr.mxu0 %v3833_v3  ;;  %2615 = vmatprep.subr.mxu1 %v3833_v3 }
  0x3a   :  { %2589 = vmatpush3.msra.mxu0 %v3205_v55  ;;  %2616 = vmatpush3.msra.mxu1 %v3072_v12 }
  0x3b   :  { %2590 = vmatprep.subr.mxu0 %v3833_v3  ;;  %2617 = vmatprep.subr.mxu1 %v3833_v3 }
  0x3c   :  { %2591 = vmatpush3.msra.mxu0 %v3224_v61  ;;  %2618 = vmatpush3.msra.mxu1 %v3091_v17 }
  0x3d   :  { %2592 = vmatprep.subr.mxu0 %v3833_v3  ;;  %2619 = vmatprep.subr.mxu1 %v3833_v3 }
  0x3e   :  { %2593 = vmatpush3.msra.mxu0 %v3246_v8  ;;  %2620 = vmatpush3.msra.mxu1 %v3116_v25 }
  0x3f   :  { %2594 = vmatprep.subr.mxu0 %v3833_v3  ;;  %2621 = vmatprep.subr.mxu1 %v3833_v3 }
  0x40   :  { %2595 = vmatpush3.msra.mxu0 %v3266_v31  ;;  %2622 = vmatpush3.msra.mxu1 %v3125_v28 }
  0x41   :  { %2596 = vmatprep.subr.mxu0 %v3833_v3  ;;  %2623 = vmatprep.subr.mxu1 %v3833_v3 }
  0x42   :  { %2597 = vmatpush3.msra.mxu0 %v3282_v41  ;;  %2624 = vmatpush3.msra.mxu1 %v3144_v35 }
  0x43   :  { %2598 = vmatprep.subr.mxu0 %v3833_v3  ;;  %2625 = vmatprep.subr.mxu1 %v3833_v3 }
  0x44   :  { %2599 = vmatpush3.msra.mxu0 %v3297_v54  ;;  %2626 = vmatpush3.msra.mxu1 %v3172_v45 }
  0x45   :  { %2600 = vmatprep.subr.mxu0 %v3833_v3  ;;  %2627 = vmatprep.subr.mxu1 %v3833_v3 }
  0x46   :  { %2601 = vmatpush3.msra.mxu0 %v3311_v50  ;;  %2602 = vmatprep.mubr.msk.f32.mxu0 %vm3010_vm0, %v3833_v3 }
  0x47   :  { %2628 = vmatpush3.msra.mxu1 %v3182_v48  ;;  %2603 = vmatmul.mubr.f32.vlgmr.msra.gmra.mxu0 %v3263_v26  ;;  %v687_v26 = vsel %vm685_vm1, %v38_v0, 0 }
  0x48   :  { %2629 = vmatprep.subr.mxu1 %v3833_v3  ;;  %2640 = vmatprep.subr.mxu0 %v3833_v3  ;;  %v3517_v42 = vand.u32 4294901760, %v687_v26 }
  0x49   :  { %2630 = vmatpush3.msra.mxu1 %v3218_v59  ;;  %2641 = vmatpush3.msra.mxu0 %v3108_v22 }
  0x4a   :  { %2631 = vmatprep.subr.mxu1 %v3833_v3  ;;  %2642 = vmatprep.subr.mxu0 %v3833_v3  ;;  %v3520_v9 = vsub.f32 %v687_v26, %v3517_v42 }
  0x4b   :  { %2632 = vmatpush3.msra.mxu1 %v3231_v63  ;;  %2643 = vmatpush3.msra.mxu0 %v3111_v23 }
  0x4c   :  { %2633 = vmatprep.subr.mxu1 %v3833_v3  ;;  %2644 = vmatprep.subr.mxu0 %v3833_v3 }
  0x4d   :  { %2634 = vmatpush3.msra.mxu1 %v3252_v13  ;;  %2645 = vmatpush3.msra.mxu0 %v3114_v24 }
  0x4e   :  { %2635 = vmatprep.subr.mxu1 %v3833_v3  ;;  %2646 = vmatprep.subr.mxu0 %v3833_v3 }
  0x4f   :  { %2636 = vmatpush3.msra.mxu1 %v3270_v32  ;;  %2637 = vmatprep.mubr.msk.f32.mxu1 %vm3010_vm0, %v3833_v3 }
  0x50   :  { %2647 = vmatpush3.msra.mxu0 %v3123_v27  ;;  %2638 = vmatmul.mubr.f32.vlgmr.msra.gmra.mxu1 %v3861_v51 }
  0x51   :  { %2648 = vmatprep.subr.mxu0 %v3833_v3  ;;  %2675 = vmatprep.subr.mxu1 %v3833_v3 }
  0x52   :  { %2649 = vmatpush3.msra.mxu0 %v3128_v29  ;;  %2676 = vmatpush3.msra.mxu1 %v3052_v4 }
  0x53   :  { %2650 = vmatprep.subr.mxu0 %v3833_v3  ;;  %2677 = vmatprep.subr.mxu1 %v3833_v3 }
  0x54   :  { %2651 = vmatpush3.msra.mxu0 %v3157_v40  ;;  %2678 = vmatpush3.msra.mxu1 %v3054_v5 }
  0x55   :  { %2652 = vmatprep.subr.mxu0 %v3833_v3  ;;  %2679 = vmatprep.subr.mxu1 %v3833_v3 }
  0x56   :  { %2653 = vmatpush3.msra.mxu0 %v3175_v46  ;;  %2680 = vmatpush3.msra.mxu1 %v3056_v6 }
  0x57   :  { %2654 = vmatprep.subr.mxu0 %v3833_v3  ;;  %2681 = vmatprep.subr.mxu1 %v3833_v3 }
  0x58   :  { %2655 = vmatpush3.msra.mxu0 %v3199_v53  ;;  %2682 = vmatpush3.msra.mxu1 %v3068_v10 }
  0x59   :  { %2656 = vmatprep.subr.mxu0 %v3833_v3  ;;  %2683 = vmatprep.subr.mxu1 %v3833_v3 }
  0x5a   :  { %2657 = vmatpush3.msra.mxu0 %v3212_v57  ;;  %2684 = vmatpush3.msra.mxu1 %v3070_v11 }
  0x5b   :  { %2658 = vmatprep.subr.mxu0 %v3833_v3  ;;  %2685 = vmatprep.subr.mxu1 %v3833_v3 }
  0x5c   :  { %2659 = vmatpush3.msra.mxu0 %v3240_v2  ;;  %2686 = vmatpush3.msra.mxu1 %v3072_v12 }
  0x5d   :  { %2660 = vmatprep.subr.mxu0 %v3833_v3  ;;  %2687 = vmatprep.subr.mxu1 %v3833_v3 }
  0x5e   :  { %2661 = vmatpush3.msra.mxu0 %v3259_v19  ;;  %2688 = vmatpush3.msra.mxu1 %v3091_v17 }
  0x5f   :  { %2662 = vmatprep.subr.mxu0 %v3833_v3  ;;  %2689 = vmatprep.subr.mxu1 %v3833_v3 }
  0x60   :  { %2663 = vmatpush3.msra.mxu0 %v3279_v39  ;;  %2690 = vmatpush3.msra.mxu1 %v3116_v25 }
  0x61   :  { %2664 = vmatprep.subr.mxu0 %v3833_v3  ;;  %2691 = vmatprep.subr.mxu1 %v3833_v3 }
  0x62   :  { %2665 = vmatpush3.msra.mxu0 %v3294_v58  ;;  %2692 = vmatpush3.msra.mxu1 %v3125_v28 }
  0x63   :  { %2666 = vmatprep.subr.mxu0 %v3833_v3  ;;  %2693 = vmatprep.subr.mxu1 %v3833_v3 }
  0x64   :  { %2667 = vmatpush3.msra.mxu0 %v3308_v52  ;;  %2694 = vmatpush3.msra.mxu1 %v3144_v35 }
  0x65   :  { %2668 = vmatprep.subr.mxu0 %v3833_v3  ;;  %2695 = vmatprep.subr.mxu1 %v3833_v3 }
  0x66   :  { %2669 = vmatpush3.msra.mxu0 %v3325_v7  ;;  %2696 = vmatpush3.msra.mxu1 %v3172_v45 }
  0x67   :  { %2670 = vmatprep.subr.mxu0 %v3833_v3  ;;  %2697 = vmatprep.subr.mxu1 %v3833_v3 }
  0x68   :  { %2671 = vmatpush3.msra.mxu0 %v3336_v36  ;;  %2672 = vmatprep.mubr.msk.f32.mxu0 %vm3010_vm0, %v3833_v3 }
  0x69   :  { %2698 = vmatpush3.msra.mxu1 %v3182_v48  ;;  %2673 = vmatmul.mubr.f32.vlgmr.msra.gmra.mxu0 %v3227_v62 }
  0x6a   :  { %2699 = vmatprep.subr.mxu1 %v3833_v3  ;;  %2707 = vmatprep.mubr.msk.f32.mxu1 %vm3010_vm0, %v3833_v3 }
  0x6b   :  { %2700 = vmatpush3.msra.mxu1 %v3218_v59  ;;  %2710 = vmatprep.subr.mxu0 %v3833_v3 }
  0x6c   :  { %2701 = vmatprep.subr.mxu1 %v3833_v3  ;;  %2712 = vmatprep.mubr.msk.f32.mxu0 %vm3010_vm0, %v3833_v3 }
  0x6d   :  { %2702 = vmatpush3.msra.mxu1 %v3231_v63  ;;  %2711 = vmatpush3.msra.mxu0 %v3517_v42 }
  0x6e   :  { %2703 = vmatprep.subr.mxu1 %v3833_v3  ;;  %2720 = vmatprep.subr.mxu0 %v3833_v3 }
  0x6f   :  { %2704 = vmatpush3.msra.mxu1 %v3252_v13 }
  0x70   :  { %2705 = vmatprep.subr.mxu1 %v3833_v3 }
  0x71   :  { %2706 = vmatpush3.msra.mxu1 %v3270_v32 }
  0x72   :  { %2708 = vmatmul.mubr.f32.vlgmr.msra.gmra.mxu1 %v3227_v62  ;;  %2715 = vmatprep.subr.mxu1 %v3833_v3  ;;  %v3525_v62 = vand.u32 4294901760, %v3520_v9 }
  0x73   :  { %2717 = vmatprep.mubr.msk.f32.mxu1 %vm3010_vm0, %v3833_v3 }
  0x74   :  { %v799_v51 = vsub.f32 %v3520_v9, %v3525_v62 }
  0x76   :  { %v3529_v36 = vand.u32 4294901760, %v799_v51 }
  0x78   :  { %3862 = vst [vmem:[#allocation29_spill] sm:$0xff] %v3529_v36  ;;  %2716 = vmatpush3.msra.mxu1 %v3529_v36 }
  0x79   :  { %2725 = vmatprep.subr.mxu1 %v3833_v3 }
  0xe7   :  { %v126_v0 = vpop.f32.mrf.mxu0 }
  0xe9   :  { %v2534_v7 = vpop.f32.mrf.mxu0 }
  0xee   :  { %v277_v26 = vpop.f32.mrf.mxu1 }
  0xef   :  { %v278_v53 = vadd.f32 %v277_v26, %v126_v0 }
  0xf0   :  { %v2569_v52 = vpop.f32.mrf.mxu1 }
 0x107   :  { %v381_v58 = vpop.f32.mrf.mxu0 }
 0x108   :  { %v382_v40 = vadd.f32 %v381_v58, %v278_v53 }
 0x109   :  { %v2604_v39 = vpop.f32.mrf.mxu0 }
 0x10a   :  { %v3863_v39 = vmov 0.0  }
 0x110   :  { %v470_v19 = vpop.f32.mrf.mxu1 }
 0x111   :  { %v471_v29 = vadd.f32 %v470_v19, %v382_v40  ;;  %v3870_v40 = vld [vmem:[#allocation25_spill] sm:$0xff] }
 0x112   :  { %v2639_v2 = vpop.f32.mrf.mxu1 }
 0x129   :  { %v589_v57 = vpop.f32.mrf.mxu0 }
 0x12a   :  { %v590_v27 = vadd.f32 %v589_v57, %v471_v29 }
 0x12b   :  { %v2674_v46 = vpop.f32.mrf.mxu0 }
 0x132   :  { %v676_v51 = vpop.f32.mrf.mxu1 }
 0x133   :  { %v677_v24 = vadd.f32 %v676_v51, %v590_v27  ;;  %v3867_v27 = vld [vmem:[#allocation19_spill] sm:$0xff] }
 0x134   :  { %v2709_v36 = vpop.f32.mrf.mxu1 }
 0x135   :  { %v680_v23 = vmul.f32 0.03125, %v677_v24 }
 0x137   :  { %v683_v3 = vsel %vm681_vm2, %v680_v23, 0  ;;  %v3866_v23 = vld [vmem:[#allocation17_spill] sm:$0xff] }
 0x138   :  { %v755_v7 = vand.u32 4294901760, %v683_v3 }
 0x13a   :  { %v756_v22 = vsub.f32 %v683_v3, %v755_v7  ;;  %2718 = vmatmul.mubr.f32.vlgmr.msra.gmra.mxu1 %v755_v7  ;;  %v3864_v3 = vld [vmem:[#allocation13_spill] sm:$0xff] }
 0x13b   :  { %2726 = vmatpush3.msra.mxu1 %v3517_v42  ;;  %2727 = vmatprep.mubr.msk.f32.mxu1 %vm3010_vm0, %v3863_v39 }
 0x13c   :  { %v757_v2 = vand.u32 4294901760, %v756_v22  ;;  %2735 = vmatprep.subr.mxu1 %v3863_v39 }
 0x13e   :  { %2728 = vmatmul.mubr.f32.vlgmr.msra.gmra.mxu1 %v757_v2  ;;  %v758_v29 = vsub.f32 %v756_v22, %v757_v2 }
 0x13f   :  { %2736 = vmatpush3.msra.mxu1 %v3517_v42  ;;  %2737 = vmatprep.mubr.msk.f32.mxu1 %vm3010_vm0, %v3863_v39 }
 0x140   :  { %v759_v24 = vand.u32 4294901760, %v758_v29  ;;  %2775 = vmatprep.subr.mxu1 %v3863_v39 }
 0x142   :  { %2713 = vmatmul.mubr.f32.vlgmr.msra.gmra.mxu0 %v759_v24  ;;  %2738 = vmatmul.mubr.f32.vlgmr.msra.gmra.mxu1 %v755_v7 }
 0x143   :  { %2721 = vmatpush3.msra.mxu0 %v3520_v9  ;;  %2722 = vmatprep.mubr.msk.f32.mxu0 %vm3010_vm0, %v3863_v39 }
 0x144   :  { %2730 = vmatprep.subr.mxu0 %v3863_v39  ;;  %2776 = vmatpush3.msra.mxu1 %v3150_v37  ;;  %v3868_v37 = vld [vmem:[#allocation21_spill] sm:$0xff] }
 0x145   :  { %2777 = vmatprep.subr.mxu1 %v3863_v39  ;;  %2807 = vmatprep.mubr.msk.f32.mxu1 %vm3010_vm0, %v3863_v39 }
 0x146   :  { %2723 = vmatmul.mubr.f32.vlgmr.msra.gmra.mxu0 %v756_v22  ;;  %2778 = vmatpush3.msra.mxu1 %v3152_v38  ;;  %v3865_v22 = vld [vmem:[#allocation15_spill] sm:$0xff] }
 0x147   :  { %2731 = vmatpush3.msra.mxu0 %v3525_v62  ;;  %2732 = vmatprep.mubr.msk.f32.mxu0 %vm3010_vm0, %v3863_v39  ;;  %v3869_v38 = vld [vmem:[#allocation23_spill] sm:$0xff] }
 0x148   :  { %2779 = vmatprep.subr.mxu1 %v3863_v39  ;;  %2740 = vmatprep.subr.mxu0 %v3863_v39 }
 0x149   :  { %2780 = vmatpush3.msra.mxu1 %v3170_v44 }
 0x14a   :  { %2733 = vmatmul.mubr.f32.vlgmr.msra.gmra.mxu0 %v755_v7  ;;  %2781 = vmatprep.subr.mxu1 %v3863_v39  ;;  %v3871_v7 = vld [vmem:[#allocation12_spill] sm:$0xff] }
 0x14b   :  { %2782 = vmatpush3.msra.mxu1 %v3864_v3  ;;  %2741 = vmatpush3.msra.mxu0 %v3052_v4 }
 0x14c   :  { %2783 = vmatprep.subr.mxu1 %v3863_v39  ;;  %2742 = vmatprep.subr.mxu0 %v3863_v39 }
 0x14d   :  { %2784 = vmatpush3.msra.mxu1 %v3865_v22  ;;  %2743 = vmatpush3.msra.mxu0 %v3054_v5 }
 0x14e   :  { %2785 = vmatprep.subr.mxu1 %v3863_v39  ;;  %2744 = vmatprep.subr.mxu0 %v3863_v39 }
 0x14f   :  { %2786 = vmatpush3.msra.mxu1 %v3866_v23  ;;  %2745 = vmatpush3.msra.mxu0 %v3056_v6 }
 0x150   :  { %2787 = vmatprep.subr.mxu1 %v3863_v39  ;;  %2746 = vmatprep.subr.mxu0 %v3863_v39 }
 0x151   :  { %2788 = vmatpush3.msra.mxu1 %v3867_v27  ;;  %2747 = vmatpush3.msra.mxu0 %v3068_v10 }
 0x152   :  { %2789 = vmatprep.subr.mxu1 %v3863_v39  ;;  %2748 = vmatprep.subr.mxu0 %v3863_v39 }
 0x153   :  { %2790 = vmatpush3.msra.mxu1 %v3868_v37  ;;  %2749 = vmatpush3.msra.mxu0 %v3070_v11 }
 0x154   :  { %2791 = vmatprep.subr.mxu1 %v3863_v39  ;;  %2750 = vmatprep.subr.mxu0 %v3863_v39 }
 0x155   :  { %2792 = vmatpush3.msra.mxu1 %v3869_v38  ;;  %2751 = vmatpush3.msra.mxu0 %v3072_v12 }
 0x156   :  { %2793 = vmatprep.subr.mxu1 %v3863_v39  ;;  %2752 = vmatprep.subr.mxu0 %v3863_v39 }
 0x157   :  { %2794 = vmatpush3.msra.mxu1 %v3870_v40  ;;  %2753 = vmatpush3.msra.mxu0 %v3091_v17 }
 0x158   :  { %2795 = vmatprep.subr.mxu1 %v3863_v39  ;;  %2754 = vmatprep.subr.mxu0 %v3863_v39 }
 0x159   :  { %2796 = vmatpush3.msra.mxu1 %v3317_v60  ;;  %2755 = vmatpush3.msra.mxu0 %v3116_v25 }
 0x15a   :  { %2797 = vmatprep.subr.mxu1 %v3863_v39  ;;  %2756 = vmatprep.subr.mxu0 %v3863_v39 }
 0x15b   :  { %2798 = vmatpush3.msra.mxu1 %v3331_v49  ;;  %2757 = vmatpush3.msra.mxu0 %v3125_v28 }
 0x15c   :  { %2799 = vmatprep.subr.mxu1 %v3863_v39  ;;  %2758 = vmatprep.subr.mxu0 %v3863_v39 }
 0x15d   :  { %2800 = vmatpush3.msra.mxu1 %v3342_v56  ;;  %2759 = vmatpush3.msra.mxu0 %v3144_v35 }
 0x15e   :  { %2801 = vmatprep.subr.mxu1 %v3863_v39  ;;  %2760 = vmatprep.subr.mxu0 %v3863_v39 }
 0x15f   :  { %2802 = vmatpush3.msra.mxu1 %v3350_v1  ;;  %2761 = vmatpush3.msra.mxu0 %v3172_v45 }
 0x160   :  { %2803 = vmatprep.subr.mxu1 %v3863_v39  ;;  %2762 = vmatprep.subr.mxu0 %v3863_v39 }
 0x161   :  { %2804 = vmatpush3.msra.mxu1 %v3357_v14  ;;  %2763 = vmatpush3.msra.mxu0 %v3182_v48 }
 0x162   :  { %2805 = vmatprep.subr.mxu1 %v3863_v39  ;;  %2764 = vmatprep.subr.mxu0 %v3863_v39 }
 0x163   :  { %2806 = vmatpush3.msra.mxu1 %v3363_v33  ;;  %2765 = vmatpush3.msra.mxu0 %v3218_v59 }
 0x164   :  { %2845 = vmatprep.subr.mxu1 %v3863_v39  ;;  %2766 = vmatprep.subr.mxu0 %v3863_v39 }
 0x165   :  { %2767 = vmatpush3.msra.mxu0 %v3231_v63  ;;  %2772 = vmatprep.mubr.msk.f32.mxu0 %vm3010_vm0, %v3863_v39 }
 0x166   :  { %2768 = vmatprep.subr.mxu0 %v3863_v39 }
 0x167   :  { %2769 = vmatpush3.msra.mxu0 %v3252_v13 }
 0x168   :  { %2770 = vmatprep.subr.mxu0 %v3863_v39 }
 0x169   :  { %2771 = vmatpush3.msra.mxu0 %v3270_v32 }
 0x16a   :  { %2810 = vmatprep.subr.mxu0 %v3863_v39 }
 0x1fa   :  { %v837_v44 = vpop.f32.mrf.mxu1 }
 0x1fc   :  { %v2719_v46 = vpop.f32.mrf.mxu1 }
 0x1fe   :  { %v985_v53 = vpop.f32.mrf.mxu1 }
 0x200   :  { %v2729_v56 = vpop.f32.mrf.mxu1 }
 0x202   :  { %v761_v57 = vpop.f32.mrf.mxu0  ;;  %v1131_v19 = vpop.f32.mrf.mxu1 }
 0x203   :  { %v838_v1 = vadd.f32 %v837_v44, %v761_v57 }
 0x204   :  { %v2714_v52 = vpop.f32.mrf.mxu0  ;;  %v2739_v58 = vpop.f32.mrf.mxu1 }
 0x206   :  { %v911_v60 = vpop.f32.mrf.mxu0 }
 0x207   :  { %v912_v49 = vadd.f32 %v911_v60, %v838_v1 }
 0x208   :  { %v2724_v36 = vpop.f32.mrf.mxu0 }
 0x209   :  { %v986_v14 = vadd.f32 %v985_v53, %v912_v49 }
 0x20a   :  { %v1059_v33 = vpop.f32.mrf.mxu0 }
 0x20b   :  { %v1060_v0 = vadd.f32 %v1059_v33, %v986_v14 }
 0x20c   :  { %v2734_v26 = vpop.f32.mrf.mxu0 }
 0x20d   :  { %v1132_v51 = vadd.f32 %v1131_v19, %v1060_v0 }
 0x20f   :  { %v3619_v2 = vsub.f32 %v3871_v7, %v1132_v51 }
 0x211   :  { %v1136_v29 = vmul.f32 %v3619_v2, %v3619_v2 }
 0x213   :  { %v3623_v24 = vand.u32 4294901760, %v1136_v29 }
 0x215   :  { %2808 = vmatmul.mubr.f32.vlgmr.msra.gmra.mxu1 %v3623_v24  ;;  %v3627_v3 = vsub.f32 %v1136_v29, %v3623_v24 }
 0x216   :  { %2846 = vmatpush3.msra.mxu1 %v3052_v4  ;;  %2877 = vmatprep.mubr.msk.f32.mxu1 %vm3010_vm0, %v3863_v39 }
 0x217   :  { %2847 = vmatprep.subr.mxu1 %v3863_v39  ;;  %v1220_v22 = vand.u32 4294901760, %v3627_v3 }
 0x218   :  { %2848 = vmatpush3.msra.mxu1 %v3054_v5 }
 0x219   :  { %2849 = vmatprep.subr.mxu1 %v3863_v39  ;;  %v1221_v23 = vsub.f32 %v3627_v3, %v1220_v22 }
 0x21a   :  { %2850 = vmatpush3.msra.mxu1 %v3056_v6 }
 0x21b   :  { %2851 = vmatprep.subr.mxu1 %v3863_v39  ;;  %v1222_v27 = vand.u32 4294901760, %v1221_v23 }
 0x21c   :  { %2852 = vmatpush3.msra.mxu1 %v3068_v10 }
 0x21d   :  { %2853 = vmatprep.subr.mxu1 %v3863_v39  ;;  %2773 = vmatmul.mubr.f32.vlgmr.msra.gmra.mxu0 %v1222_v27 }
 0x21e   :  { %2811 = vmatpush3.msra.mxu0 %v3086_v15  ;;  %2854 = vmatpush3.msra.mxu1 %v3070_v11  ;;  %v3878_v15 = vld [vmem:[#allocation11_spill] sm:$0xff] }
 0x21f   :  { %2812 = vmatprep.subr.mxu0 %v3863_v39  ;;  %2855 = vmatprep.subr.mxu1 %v3863_v39 }
 0x220   :  { %2813 = vmatpush3.msra.mxu0 %v3089_v16  ;;  %2856 = vmatpush3.msra.mxu1 %v3072_v12  ;;  %v3879_v16 = vld [vmem:[#allocation14_spill] sm:$0xff] }
 0x221   :  { %2814 = vmatprep.subr.mxu0 %v3863_v39  ;;  %2857 = vmatprep.subr.mxu1 %v3863_v39 }
 0x222   :  { %2815 = vmatpush3.msra.mxu0 %v3094_v18  ;;  %2858 = vmatpush3.msra.mxu1 %v3091_v17  ;;  %v3881_v18 = vld [vmem:[#allocation18_spill] sm:$0xff] }
 0x223   :  { %2816 = vmatprep.subr.mxu0 %v3863_v39  ;;  %2859 = vmatprep.subr.mxu1 %v3863_v39 }
 0x224   :  { %2817 = vmatpush3.msra.mxu0 %v3101_v20  ;;  %2860 = vmatpush3.msra.mxu1 %v3116_v25  ;;  %v3882_v20 = vld [vmem:[#allocation20_spill] sm:$0xff] }
 0x225   :  { %2818 = vmatprep.subr.mxu0 %v3863_v39  ;;  %2861 = vmatprep.subr.mxu1 %v3863_v39 }
 0x226   :  { %2819 = vmatpush3.msra.mxu0 %v3104_v21  ;;  %2862 = vmatpush3.msra.mxu1 %v3125_v28  ;;  %v3883_v21 = vld [vmem:[#allocation22_spill] sm:$0xff] }
 0x227   :  { %2820 = vmatprep.subr.mxu0 %v3863_v39  ;;  %2863 = vmatprep.subr.mxu1 %v3863_v39 }
 0x228   :  { %2821 = vmatpush3.msra.mxu0 %v3131_v30  ;;  %2864 = vmatpush3.msra.mxu1 %v3144_v35  ;;  %v3886_v30 = vld [vmem:[#allocation29_spill] sm:$0xff] }
 0x229   :  { %2822 = vmatprep.subr.mxu0 %v3863_v39  ;;  %2865 = vmatprep.subr.mxu1 %v3863_v39 }
 0x22a   :  { %2823 = vmatpush3.msra.mxu0 %v3141_v34  ;;  %2866 = vmatpush3.msra.mxu1 %v3172_v45  ;;  %v3887_v34 = vld [vmem:[#allocation27_spill] sm:$0xff] }
 0x22b   :  { %2824 = vmatprep.subr.mxu0 %v3863_v39  ;;  %2867 = vmatprep.subr.mxu1 %v3863_v39 }
 0x22c   :  { %2825 = vmatpush3.msra.mxu0 %v3166_v43  ;;  %2868 = vmatpush3.msra.mxu1 %v3182_v48 }
 0x22d   :  { %2826 = vmatprep.subr.mxu0 %v3863_v39  ;;  %2869 = vmatprep.subr.mxu1 %v3863_v39 }
 0x22e   :  { %2827 = vmatpush3.msra.mxu0 %v3178_v47  ;;  %2870 = vmatpush3.msra.mxu1 %v3218_v59 }
 0x22f   :  { %2828 = vmatprep.subr.mxu0 %v3863_v39  ;;  %2871 = vmatprep.subr.mxu1 %v3863_v39 }
 0x230   :  { %2829 = vmatpush3.msra.mxu0 %v3205_v55  ;;  %2872 = vmatpush3.msra.mxu1 %v3231_v63 }
 0x231   :  { %2830 = vmatprep.subr.mxu0 %v3863_v39  ;;  %2873 = vmatprep.subr.mxu1 %v3863_v39 }
 0x232   :  { %2831 = vmatpush3.msra.mxu0 %v3224_v61  ;;  %2874 = vmatpush3.msra.mxu1 %v3252_v13 }
 0x233   :  { %2832 = vmatprep.subr.mxu0 %v3863_v39  ;;  %2875 = vmatprep.subr.mxu1 %v3863_v39 }
 0x234   :  { %2833 = vmatpush3.msra.mxu0 %v3246_v8  ;;  %2876 = vmatpush3.msra.mxu1 %v3270_v32 }
 0x235   :  { %2834 = vmatprep.subr.mxu0 %v3863_v39  ;;  %2878 = vmatmul.mubr.f32.vlgmr.msra.gmra.mxu1 %v1220_v22 }
 0x236   :  { %2915 = vmatprep.subr.mxu1 %v3863_v39  ;;  %2835 = vmatpush3.msra.mxu0 %v3266_v31 }
 0x237   :  { %2916 = vmatpush3.msra.mxu1 %v3052_v4  ;;  %2836 = vmatprep.subr.mxu0 %v3863_v39  ;;  %v3872_v4 = vld [vmem:[#allocation5_spill] sm:$0xff] }
 0x238   :  { %2917 = vmatprep.subr.mxu1 %v3863_v39  ;;  %2837 = vmatpush3.msra.mxu0 %v3282_v41 }
 0x239   :  { %2918 = vmatpush3.msra.mxu1 %v3054_v5  ;;  %2838 = vmatprep.subr.mxu0 %v3863_v39  ;;  %v3873_v5 = vld [vmem:[#allocation6_spill] sm:$0xff] }
 0x23a   :  { %2919 = vmatprep.subr.mxu1 %v3863_v39  ;;  %2839 = vmatpush3.msra.mxu0 %v3297_v54 }
 0x23b   :  { %2920 = vmatpush3.msra.mxu1 %v3056_v6  ;;  %2840 = vmatprep.subr.mxu0 %v3863_v39  ;;  %v3874_v6 = vld [vmem:[#allocation7_spill] sm:$0xff] }
 0x23c   :  { %2921 = vmatprep.subr.mxu1 %v3863_v39  ;;  %2841 = vmatpush3.msra.mxu0 %v3311_v50 }
 0x23d   :  { %2842 = vmatprep.mubr.msk.f32.mxu0 %vm3010_vm0, %v3863_v39  ;;  %2922 = vmatpush3.msra.mxu1 %v3068_v10  ;;  %v3875_v10 = vld [vmem:[#allocation8_spill] sm:$0xff] }
 0x23e   :  { %2843 = vmatmul.mubr.f32.vlgmr.msra.gmra.mxu0 %v3627_v3  ;;  %2880 = vmatprep.subr.mxu0 %v3863_v39 }
 0x23f   :  { %2923 = vmatprep.subr.mxu1 %v3863_v39  ;;  %2881 = vmatpush3.msra.mxu0 %v3872_v4 }
 0x240   :  { %2924 = vmatpush3.msra.mxu1 %v3070_v11  ;;  %2882 = vmatprep.subr.mxu0 %v3863_v39  ;;  %v3876_v11 = vld [vmem:[#allocation9_spill] sm:$0xff] }
 0x241   :  { %2925 = vmatprep.subr.mxu1 %v3863_v39  ;;  %2883 = vmatpush3.msra.mxu0 %v3873_v5 }
 0x242   :  { %2926 = vmatpush3.msra.mxu1 %v3072_v12  ;;  %2884 = vmatprep.subr.mxu0 %v3863_v39  ;;  %v3877_v12 = vld [vmem:[#allocation10_spill] sm:$0xff] }
 0x243   :  { %2927 = vmatprep.subr.mxu1 %v3863_v39  ;;  %2885 = vmatpush3.msra.mxu0 %v3874_v6 }
 0x244   :  { %2928 = vmatpush3.msra.mxu1 %v3091_v17  ;;  %2886 = vmatprep.subr.mxu0 %v3863_v39  ;;  %v3880_v17 = vld [vmem:[#allocation16_spill] sm:$0xff] }
 0x245   :  { %2929 = vmatprep.subr.mxu1 %v3863_v39  ;;  %2887 = vmatpush3.msra.mxu0 %v3875_v10 }
 0x246   :  { %2930 = vmatpush3.msra.mxu1 %v3116_v25  ;;  %2888 = vmatprep.subr.mxu0 %v3863_v39  ;;  %v3884_v25 = vld [vmem:[#allocation24_spill] sm:$0xff] }
 0x247   :  { %2931 = vmatprep.subr.mxu1 %v3863_v39  ;;  %2889 = vmatpush3.msra.mxu0 %v3876_v11  ;;  %v2271_v11 = vld [vmem:[%s3805_s2] ss:$0 sm:$0xff] }
 0x248   :  { %2932 = vmatpush3.msra.mxu1 %v3125_v28  ;;  %2890 = vmatprep.subr.mxu0 %v3863_v39  ;;  %v3885_v28 = vld [vmem:[#allocation26_spill] sm:$0xff] }
 0x249   :  { %2933 = vmatprep.subr.mxu1 %v3863_v39  ;;  %2891 = vmatpush3.msra.mxu0 %v3877_v12 }
 0x24a   :  { %2934 = vmatpush3.msra.mxu1 %v3144_v35  ;;  %2892 = vmatprep.subr.mxu0 %v3863_v39  ;;  %v3888_v35 = vld [vmem:[#allocation28_spill] sm:$0xff] }
 0x24b   :  { %2935 = vmatprep.subr.mxu1 %v3863_v39  ;;  %2893 = vmatpush3.msra.mxu0 %v3878_v15 }
 0x24c   :  { %2936 = vmatpush3.msra.mxu1 %v3172_v45  ;;  %2894 = vmatprep.subr.mxu0 %v3863_v39 }
 0x24d   :  { %2937 = vmatprep.subr.mxu1 %v3863_v39  ;;  %2895 = vmatpush3.msra.mxu0 %v3879_v16 }
 0x24e   :  { %2938 = vmatpush3.msra.mxu1 %v3182_v48  ;;  %2896 = vmatprep.subr.mxu0 %v3863_v39 }
 0x24f   :  { %2939 = vmatprep.subr.mxu1 %v3863_v39  ;;  %2897 = vmatpush3.msra.mxu0 %v3880_v17 }
 0x250   :  { %2940 = vmatpush3.msra.mxu1 %v3218_v59  ;;  %2898 = vmatprep.subr.mxu0 %v3863_v39 }
 0x251   :  { %2941 = vmatprep.subr.mxu1 %v3863_v39  ;;  %2899 = vmatpush3.msra.mxu0 %v3881_v18 }
 0x252   :  { %2942 = vmatpush3.msra.mxu1 %v3231_v63  ;;  %2900 = vmatprep.subr.mxu0 %v3863_v39 }
 0x253   :  { %2943 = vmatprep.subr.mxu1 %v3863_v39  ;;  %2901 = vmatpush3.msra.mxu0 %v3882_v20 }
 0x254   :  { %2944 = vmatpush3.msra.mxu1 %v3252_v13  ;;  %2902 = vmatprep.subr.mxu0 %v3863_v39 }
 0x255   :  { %2945 = vmatprep.subr.mxu1 %v3863_v39  ;;  %2903 = vmatpush3.msra.mxu0 %v3883_v21 }
 0x256   :  { %2946 = vmatpush3.msra.mxu1 %v3270_v32  ;;  %2947 = vmatprep.mubr.msk.f32.mxu1 %vm3010_vm0, %v3863_v39 }
 0x257   :  { %2904 = vmatprep.subr.mxu0 %v3863_v39  ;;  %2948 = vmatmul.mubr.f32.vlgmr.msra.gmra.mxu1 %v3623_v24 }
 0x258   :  { %2905 = vmatpush3.msra.mxu0 %v3884_v25  ;;  %2912 = vmatprep.mubr.msk.f32.mxu0 %vm3010_vm0, %v3863_v39 }
 0x259   :  { %2906 = vmatprep.subr.mxu0 %v3863_v39  ;;  %2955 = vmatprep.subr.mxu1 %v3863_v39 }
 0x25a   :  { %2907 = vmatpush3.msra.mxu0 %v3885_v28  ;;  %2956 = vmatpush3.msra.mxu1 %v3886_v30 }
 0x25b   :  { %2908 = vmatprep.subr.mxu0 %v3863_v39  ;;  %2957 = vmatprep.mubr.msk.f32.mxu1 %vm3010_vm0, %v3863_v39 }
 0x25c   :  { %2909 = vmatpush3.msra.mxu0 %v3887_v34  ;;  %2965 = vmatprep.subr.mxu1 %v3863_v39 }
 0x25d   :  { %2910 = vmatprep.subr.mxu0 %v3863_v39 }
 0x25e   :  { %2911 = vmatpush3.msra.mxu0 %v3888_v35 }
 0x25f   :  { %2913 = vmatmul.mubr.f32.vlgmr.msra.gmra.mxu0 %v3623_v24  ;;  %2950 = vmatprep.subr.mxu0 %v3863_v39 }
 0x260   :  { %2951 = vmatpush3.msra.mxu0 %v3517_v42  ;;  %2952 = vmatprep.mubr.msk.f32.mxu0 %vm3010_vm0, %v3863_v39 }
 0x261   :  { %2960 = vmatprep.subr.mxu0 %v3863_v39 }
 0x2d5   :  { %v1375_v43 = vpop.f32.mrf.mxu1 }
 0x2d7   :  { %v2809_v45 = vpop.f32.mrf.mxu1 }
 0x2dd   :  { %v1224_v47 = vpop.f32.mrf.mxu0 }
 0x2de   :  { %v1376_v8 = vadd.f32 %v1375_v43, %v1224_v47 }
 0x2df   :  { %v2774_v48 = vpop.f32.mrf.mxu0 }
 0x2f5   :  { %v1568_v50 = vpop.f32.mrf.mxu1 }
 0x2f7   :  { %v2879_v55 = vpop.f32.mrf.mxu1 }
 0x2fe   :  { %v1479_v59 = vpop.f32.mrf.mxu0 }
 0x2ff   :  { %v1480_v31 = vadd.f32 %v1479_v59, %v1376_v8 }
 0x300   :  { %v2844_v61 = vpop.f32.mrf.mxu0 }
 0x301   :  { %v1569_v32 = vadd.f32 %v1568_v50, %v1480_v31 }
 0x317   :  { %v1774_v63 = vpop.f32.mrf.mxu1 }
 0x319   :  { %v2949_v13 = vpop.f32.mrf.mxu1 }
 0x31f   :  { %v1687_v41 = vpop.f32.mrf.mxu0 }
 0x320   :  { %v1688_v54 = vadd.f32 %v1687_v41, %v1569_v32 }
 0x321   :  { %v2914_v37 = vpop.f32.mrf.mxu0 }
 0x322   :  { %v1775_v38 = vadd.f32 %v1774_v63, %v1688_v54 }
 0x324   :  { %v1778_v40 = vmul.f32 0.032258064, %v1775_v38 }
 0x326   :  { %2983 = vrsqrt.f32 %v1778_v40  ;;  %vm1781_vm3 = vcmp.eq.f32.partialorder %v1778_v40, inf  ;;  %v1784_v53 = vand.u32 2147483648, %v1778_v40  ;;  %vm1783_vm4 = vcmp.eq.f32.partialorder %v1778_v40, 0.0 }
 0x333   :  { %v2984_v44 = vpop.eup %2983 }
 0x334   :  { %v1780_v46 = vmul.f32 %v2984_v44, %v1778_v40 }
 0x336   :  { %v1782_v56 = vsel %vm1781_vm3, %v1778_v40, %v1780_v46 }
 0x337   :  { %v1785_v57 = vsel %vm1783_vm4, %v1784_v53, %v1782_v56 }
 0x338   :  { %v1786_v19 = vadd.f32 1e-06, %v1785_v57 }
 0x33a   :  { %2985 = vrcp.f32 %v1786_v19 }
 0x347   :  { %v2986_v52 = vpop.eup %2985 }
 0x348   :  { %v1790_v58 = vsel %vm681_vm2, %v2986_v52, 0 }
 0x349   :  { %v1858_v1 = vand.u32 4294901760, %v1790_v58 }
 0x34b   :  { %v1859_v60 = vsub.f32 %v1790_v58, %v1858_v1  ;;  %2958 = vmatmul.mubr.f32.vlgmr.msra.gmra.mxu1 %v1858_v1 }
 0x34c   :  { %2966 = vmatpush3.msra.mxu1 %v3517_v42  ;;  %2967 = vmatprep.mubr.msk.f32.mxu1 %vm3010_vm0, %v3863_v39 }
 0x34d   :  { %v1860_v49 = vand.u32 4294901760, %v1859_v60  ;;  %2975 = vmatprep.subr.mxu1 %v3863_v39 }
 0x34f   :  { %2968 = vmatmul.mubr.f32.vlgmr.msra.gmra.mxu1 %v1860_v49  ;;  %v1861_v36 = vsub.f32 %v1859_v60, %v1860_v49 }
 0x350   :  { %2976 = vmatpush3.msra.mxu1 %v3517_v42  ;;  %2977 = vmatprep.mubr.msk.f32.mxu1 %vm3010_vm0, %v3863_v39 }
 0x351   :  { %v1862_v14 = vand.u32 4294901760, %v1861_v36 }
 0x353   :  { %2953 = vmatmul.mubr.f32.vlgmr.msra.gmra.mxu0 %v1862_v14  ;;  %2978 = vmatmul.mubr.f32.vlgmr.msra.gmra.mxu1 %v1858_v1 }
 0x354   :  { %2961 = vmatpush3.msra.mxu0 %v3520_v9  ;;  %2962 = vmatprep.mubr.msk.f32.mxu0 %vm3010_vm0, %v3863_v39 }
 0x355   :  { %2970 = vmatprep.subr.mxu0 %v3863_v39 }
 0x357   :  { %2963 = vmatmul.mubr.f32.vlgmr.msra.gmra.mxu0 %v1859_v60 }
 0x358   :  { %2971 = vmatpush3.msra.mxu0 %v3525_v62  ;;  %2972 = vmatprep.mubr.msk.f32.mxu0 %vm3010_vm0, %v3863_v39  ;;  %v2270_v39 = vld [vmem:[%s3804_s1] ss:$0 sm:$0xff] }
 0x35b   :  { %2973 = vmatmul.mubr.f32.vlgmr.msra.gmra.mxu0 %v1858_v1 }
 0x40b   :  { %v1940_v42 = vpop.f32.mrf.mxu1 }
 0x40d   :  { %v2959_v33 = vpop.f32.mrf.mxu1 }
 0x40f   :  { %v2088_v0 = vpop.f32.mrf.mxu1 }
 0x411   :  { %v2969_v26 = vpop.f32.mrf.mxu1 }
 0x413   :  { %v1864_v51 = vpop.f32.mrf.mxu0  ;;  %v2234_v7 = vpop.f32.mrf.mxu1 }
 0x414   :  { %v1941_v24 = vadd.f32 %v1940_v42, %v1864_v51 }
 0x415   :  { %v2954_v29 = vpop.f32.mrf.mxu0  ;;  %v2979_v9 = vpop.f32.mrf.mxu1 }
 0x417   :  { %v2014_v3 = vpop.f32.mrf.mxu0 }
 0x418   :  { %v2015_v22 = vadd.f32 %v2014_v3, %v1941_v24 }
 0x419   :  { %v2964_v23 = vpop.f32.mrf.mxu0 }
 0x41a   :  { %v2089_v27 = vadd.f32 %v2088_v0, %v2015_v22 }
 0x41b   :  { %v2162_v4 = vpop.f32.mrf.mxu0 }
 0x41c   :  { %v2163_v5 = vadd.f32 %v2162_v4, %v2089_v27 }
 0x41d   :  { %v2974_v62 = vpop.f32.mrf.mxu0 }
 0x41e   :  { %v2235_v6 = vadd.f32 %v2234_v7, %v2163_v5 }
 0x420   :  { %v2238_v10 = vmul.f32 %v2235_v6, %v3619_v2 }
 0x422   :  { %v2246_v12 = vmul.f32 %v2270_v39, %v2238_v10 }
 0x424   :  { %v2254_v15 = vadd.f32 %v2271_v11, %v2246_v12 }
 0x426   :  { %2255 = vst [vmem:[#allocation2] sm:$0xff] %v2254_v15 }
 0x427   :  { %2998 = shalt.err (!%p2995_p4)
}
 0x428   :  { %2265 = dma.vmem_to_hbm [thread:$0]  %s2263_s6, 128, %s3808_s5, [#allocation3]  }
 0x429   :  { %3007 = dma.done.wait [#allocation3], 128  }
 0x42a   :  { %3008 = vsyncadd [#allocation3], 4294967168 }
 0x42b   :  { %2269 = vsyncpa [#allocation3], 1 }

</bundles_post_ra>
